<compile_context>
chip_gen: v6e
topology: v6e:2x2x1
jax: 0.10.0
libtpu: 0.0.40
codegen_flags: <defaults>
</compile_context>

<pallas_src>
import functools

import jax
import jax.numpy as jnp
from jax.experimental import pallas as pl
from jax.experimental.pallas import tpu as pltpu

PACK = 8            # logical batch rows packed per lane row (lane-dense I/O)
HIDDEN = 30         # fixed by the module (nn.Linear(input_size, 30))
HIDDEN_PAD = 32     # hidden padded to a lane/sublane friendly width (exact)

_VMEM_TILE_BUDGET = 40 * 1024 * 1024   # target for tiles + in-kernel temps
_VMEM_LIMIT = 48 * 1024 * 1024         # scoped VMEM limit (fits v7x's 64 MiB)


def _round_up(v, m):
    return (v + m - 1) // m * m


def _cdiv(a, b):
    return (a + b - 1) // b


def _prefer_bf16_activations():
    """bf16 bias+sigmoid on chips with bf16 VPU/EUP (v6e/v7x); f32 on v5e/older."""
    try:
        kind = jax.devices()[0].device_kind.lower()
    except Exception:
        return True
    return not any(t in kind for t in ("v2", "v3", "v4", "v5"))


def _stats_embedding_kernel(x_ref, w0_ref, b0_ref, w1_ref, b1_ref, o_ref, *,
                            bf16_act):
    # x_ref : [TILE_R, 8*INP]   f32      (8 batch rows packed per lane row)
    # w0_ref: [8*INP, 8*HP]     bf16     block-diag fc0 weight (VMEM-resident)
    # b0_ref: [1, 8*HP]         bf16|f32 tiled fc0 bias        (VMEM-resident)
    # w1_ref: [8*HP, 8*OUTP]    bf16     block-diag fc weight  (VMEM-resident)
    # b1_ref: [1, 8*OUTP]       f32      tiled fc bias         (VMEM-resident)
    # o_ref : [TILE_R, 8*OUTP]  f32      lane-dense output slab
    x = x_ref[...].astype(jnp.bfloat16)        # cast in-kernel: no extra HBM pass
    h = jnp.dot(x, w0_ref[...], preferred_element_type=jnp.float32)
    if bf16_act:
        # bf16 bias add + sigmoid: halves h VMEM ld/st traffic, bf16 EUP sigmoid.
        hb = jax.nn.sigmoid(h.astype(jnp.bfloat16) + b0_ref[...])
    else:
        # f32 activation path for chips without bf16 VPU/EUP (v5e and older).
        hb = jax.nn.sigmoid(h + b0_ref[...]).astype(jnp.bfloat16)
    y = jnp.dot(hb, w1_ref[...], preferred_element_type=jnp.float32) + b1_ref[...]
    o_ref[...] = y.astype(o_ref.dtype)


def stats_embedding_forward(x, w0, b0, w1, b1, *, tile_b=32768,
                            out_dtype=jnp.float32, bf16_act=None):
    """y = sigmoid(x @ w0 + b0) @ w1 + b1.

    x : [B, in_size]; w0: [in_size, 30]; b0: [30]; w1: [30, out]; b1: [out].
    (weights stored [in, out], equivalent to PyTorch's x @ W.T + b)
    Returns [B, out] in out_dtype (float32 by default, matching the module).
    """
    B, in_size = x.shape
    assert w0.shape == (in_size, HIDDEN)
    out_size = w1.shape[1]
    if bf16_act is None:
        bf16_act = _prefer_bf16_activations()
    out_itemsize = jnp.dtype(out_dtype).itemsize

    # Pad feature dims to multiples of 16 so 8*in / 8*out are multiples of 128
    # (unmasked 128-lane vld/vst).  Zero rows/cols keep the math exact.
    in_pad = _round_up(in_size, 16)
    out_pad = _round_up(out_size, 16)
    lane_in = PACK * in_pad
    lane_h = PACK * HIDDEN_PAD
    lane_o = PACK * out_pad

    # ---- one-time parameter packing (tiny; wrapper / XLA side) --------------
    w0p = jnp.pad(w0, ((0, in_pad - in_size), (0, HIDDEN_PAD - HIDDEN)))
    b0p = jnp.pad(b0, (0, HIDDEN_PAD - HIDDEN))
    w1p = jnp.pad(w1, ((0, HIDDEN_PAD - HIDDEN), (0, out_pad - out_size)))
    b1p = jnp.pad(b1, (0, out_pad - out_size))
    eye = jnp.eye(PACK, dtype=jnp.float32)
    w0_bd = jnp.kron(eye, w0p).astype(jnp.bfloat16)            # [8*inp, 8*32]
    w1_bd = jnp.kron(eye, w1p).astype(jnp.bfloat16)            # [8*32, 8*outp]
    act_dtype = jnp.bfloat16 if bf16_act else jnp.float32
    b0_t = jnp.tile(b0p, PACK).reshape(1, -1).astype(act_dtype)      # [1, 8*32]
    b1_t = jnp.tile(b1p, PACK).reshape(1, -1).astype(jnp.float32)    # [1, 8*outp]

    # ---- x layout: free row-major bitcast (B, in) -> (B/8, 8*in) ------------
    # x stays f32; the bf16 cast happens inside the kernel so no extra HBM
    # pad/convert pass is materialized for x.
    if in_pad != in_size:
        # TODO(synk): unaligned input_size needs a materialized column pad
        # (one extra pass over x); aligned input_size skips it entirely.
        x = jnp.pad(x, ((0, 0), (0, in_pad - in_size)))
    B_pack = _round_up(B, PACK)
    if B_pack != B:
        x = jnp.pad(x, ((0, B_pack - B), (0, 0)))   # rare ragged batch (<8 rows)
    n_r = B_pack // PACK
    x_d = x.reshape(n_r, lane_in)

    # ---- batch tiling --------------------------------------------------------
    # Big tiles amortize the ~0.35 us per-grid-step overhead; clamp to a ~40 MiB
    # VMEM footprint (double-buffered I/O + in-kernel temps) and keep >=2 grid
    # steps when the batch permits so v7x's two TensorCores both get work.
    tile_r = max(8, tile_b // PACK)
    bytes_per_row = (2 * lane_in * 4 + 2 * lane_o * out_itemsize   # dbl-buffered I/O
                     + lane_in * 2 + lane_h * 6 + lane_o * 4)      # in-kernel temps
    tile_r = min(tile_r, max(8, _VMEM_TILE_BUDGET // bytes_per_row))
    tile_r = min(tile_r, _round_up(n_r, 8))
    tile_r = max(8, tile_r // 8 * 8)
    if n_r > 8 and _cdiv(n_r, tile_r) < 2:
        tile_r = _round_up(_cdiv(n_r, 2), 8)        # >=2 steps for v7x's 2 TCs
    grid = (_cdiv(n_r, tile_r),)                    # ragged last block is fine:
                                                    # OOB reads are dead rows,
                                                    # OOB writes are discarded.

    flops = 2 * n_r * (lane_in * lane_h + lane_h * lane_o)
    bytes_accessed = (x_d.size * 4 + n_r * lane_o * out_itemsize
                      + w0_bd.size * 2 + w1_bd.size * 2
                      + b0_t.size * b0_t.dtype.itemsize + b1_t.size * 4)

    y_d = pl.pallas_call(
        functools.partial(_stats_embedding_kernel, bf16_act=bf16_act),
        out_shape=jax.ShapeDtypeStruct((n_r, lane_o), out_dtype),
        grid=grid,
        in_specs=[
            pl.BlockSpec((tile_r, lane_in), lambda i: (i, 0)),
            pl.BlockSpec(w0_bd.shape, lambda i: (0, 0)),   # weights / biases
            pl.BlockSpec(b0_t.shape, lambda i: (0, 0)),    # VMEM-resident across
            pl.BlockSpec(w1_bd.shape, lambda i: (0, 0)),   # the whole grid
            pl.BlockSpec(b1_t.shape, lambda i: (0, 0)),    # (no re-DMA)
        ],
        out_specs=pl.BlockSpec((tile_r, lane_o), lambda i: (i, 0)),
        compiler_params=pltpu.CompilerParams(
            dimension_semantics=("parallel",),             # 2-TC sharding (v7x)
            vmem_limit_bytes=_VMEM_LIMIT),
        cost_estimate=pl.CostEstimate(
            flops=flops,
            transcendentals=n_r * lane_h,
            bytes_accessed=bytes_accessed),
    )(x_d, w0_bd, b0_t, w1_bd, b1_t)

    # (n_r, 8*out_pad) row-major is bit-identical to (B_pack, out_pad).
    y = y_d.reshape(B_pack, out_pad)
    if B_pack != B or out_pad != out_size:
        y = y[:B, :out_size]
    return y


def _reference_f32(x, w0, b0, w1, b1):
    return jax.nn.sigmoid(x @ w0 + b0) @ w1 + b1


def _reference_kernel_numerics(x, w0, b0, w1, b1, bf16_act):
    # Mirrors the kernel's bf16-MXU / f32-accumulate numerics.
    xb = x.astype(jnp.bfloat16)
    w0b = w0.astype(jnp.bfloat16)
    w1b = w1.astype(jnp.bfloat16)
    h = jnp.dot(xb, w0b, preferred_element_type=jnp.float32)
    if bf16_act:
        hb = jax.nn.sigmoid(h.astype(jnp.bfloat16) + b0.astype(jnp.bfloat16))
    else:
        hb = jax.nn.sigmoid(h + b0).astype(jnp.bfloat16)
    return jnp.dot(hb, w1b, preferred_element_type=jnp.float32) + b1


if __name__ == "__main__":
    # Small deterministic setup consistent with the module:
    #   input_size=32, hidden=30 (fixed), output_size=16, batch=200.
    # tile_b=64 exercises a multi-step grid with a ragged last block; the
    # second call exercises the default tile_b / auto-clamp path.
    input_size, hidden, output_size, batch = 32, 30, 16, 200

    key = jax.random.PRNGKey(0)
    kx, kw0, kb0, kw1, kb1 = jax.random.split(key, 5)

    x = jax.random.normal(kx, (batch, input_size), dtype=jnp.float32)

    # Deterministic PyTorch-style uniform init, stored as [in, out].
    lim0 = 1.0 / (input_size ** 0.5)
    w0 = jax.random.uniform(kw0, (input_size, hidden), jnp.float32, -lim0, lim0)
    b0 = jax.random.uniform(kb0, (hidden,), jnp.float32, -lim0, lim0)
    lim1 = 1.0 / (hidden ** 0.5)
    w1 = jax.random.uniform(kw1, (hidden, output_size), jnp.float32, -lim1, lim1)
    b1 = jax.random.uniform(kb1, (output_size,), jnp.float32, -lim1, lim1)

    bf16_act = _prefer_bf16_activations()

    y_small = stats_embedding_forward(x, w0, b0, w1, b1, tile_b=64)
    y_small = jax.block_until_ready(y_small)
    y_default = stats_embedding_forward(x, w0, b0, w1, b1)
    y_default = jax.block_until_ready(y_default)

    y_ref_mirror = _reference_kernel_numerics(x, w0, b0, w1, b1, bf16_act)
    y_ref_f32 = _reference_f32(x, w0, b0, w1, b1)

    for y in (y_small, y_default):
        assert y.shape == (batch, output_size)
        assert y.dtype == jnp.float32
        assert jnp.allclose(y, y_ref_mirror, atol=1e-2, rtol=1e-2), (
            float(jnp.max(jnp.abs(y - y_ref_mirror))))
        assert jnp.allclose(y, y_ref_f32, atol=3e-2, rtol=3e-2), (
            float(jnp.max(jnp.abs(y - y_ref_f32))))
    assert jnp.allclose(y_small, y_default, atol=1e-5, rtol=1e-5)

    print("KERNEL_OK")
</pallas_src>

<mosaic_0001>
module attributes {stable_mosaic.version = 11 : i64} {
  func.func @_stats_embedding_kernel(%arg0: i32, %arg1: memref<8x256xf32, #tpu.memory_space<vmem>>, %arg2: memref<256x256xbf16, #tpu.memory_space<vmem>>, %arg3: memref<1x256xbf16, #tpu.memory_space<vmem>>, %arg4: memref<256x128xbf16, #tpu.memory_space<vmem>>, %arg5: memref<1x128xf32, #tpu.memory_space<vmem>>, %arg6: memref<8x128xf32, #tpu.memory_space<vmem>>) attributes {dimension_semantics = [#tpu.dimension_semantics<parallel>], iteration_bounds = array<i64: 4>, scalar_prefetch = 0 : i64, scratch_operands = 0 : i64, tpu.core_type = #tpu.core_type<tc>, window_params = [{transform_indices = @transform_0, window_bounds = array<i64: 8, 256>}, {pipeline_mode = #tpu.pipeline_mode<synchronous>, transform_indices = @transform_1, window_bounds = array<i64: 256, 256>}, {pipeline_mode = #tpu.pipeline_mode<synchronous>, transform_indices = @transform_2, window_bounds = array<i64: 1, 256>}, {pipeline_mode = #tpu.pipeline_mode<synchronous>, transform_indices = @transform_3, window_bounds = array<i64: 256, 128>}, {pipeline_mode = #tpu.pipeline_mode<synchronous>, transform_indices = @transform_4, window_bounds = array<i64: 1, 128>}, {transform_indices = @transform_5, window_bounds = array<i64: 8, 128>}]} {
    %c0 = arith.constant 0 : index
    %c0_0 = arith.constant 0 : index
    %0 = vector.load %arg1[%c0, %c0_0] : memref<8x256xf32, #tpu.memory_space<vmem>>, vector<8x256xf32>
    %1 = arith.truncf %0 : vector<8x256xf32> to vector<8x256xbf16>
    %c0_1 = arith.constant 0 : index
    %c0_2 = arith.constant 0 : index
    %2 = vector.load %arg2[%c0_1, %c0_2] : memref<256x256xbf16, #tpu.memory_space<vmem>>, vector<256x256xbf16>
    %cst = arith.constant dense<0.000000e+00> : vector<8x256xf32>
    %3 = tpu.matmul %1, %2, %cst {dimension_numbers = #tpu.dot_dimension_numbers<[1], [0], [0], [1], [0, 0, 1, 1], [], []>} : vector<8x256xbf16>, vector<256x256xbf16>, vector<8x256xf32> -> vector<8x256xf32>
    %4 = arith.truncf %3 : vector<8x256xf32> to vector<8x256xbf16>
    %c0_3 = arith.constant 0 : index
    %c0_4 = arith.constant 0 : index
    %5 = vector.load %arg3[%c0_3, %c0_4] : memref<1x256xbf16, #tpu.memory_space<vmem>>, vector<1x256xbf16>
    %6 = vector.broadcast %5 : vector<1x256xbf16> to vector<8x256xbf16>
    %7 = arith.addf %4, %6 : vector<8x256xbf16>
    %8 = arith.negf %7 : vector<8x256xbf16>
    %9 = math.exp %8 : vector<8x256xbf16>
    %cst_5 = arith.constant 1.000000e+00 : bf16
    %10 = vector.broadcast %cst_5 : bf16 to vector<8x256xbf16>
    %11 = arith.addf %10, %9 : vector<8x256xbf16>
    %12 = arith.divf %10, %11 : vector<8x256xbf16>
    %c0_6 = arith.constant 0 : index
    %c0_7 = arith.constant 0 : index
    %13 = vector.load %arg4[%c0_6, %c0_7] : memref<256x128xbf16, #tpu.memory_space<vmem>>, vector<256x128xbf16>
    %cst_8 = arith.constant dense<0.000000e+00> : vector<8x128xf32>
    %14 = tpu.matmul %12, %13, %cst_8 {dimension_numbers = #tpu.dot_dimension_numbers<[1], [0], [0], [1], [0, 0, 1, 1], [], []>} : vector<8x256xbf16>, vector<256x128xbf16>, vector<8x128xf32> -> vector<8x128xf32>
    %c0_9 = arith.constant 0 : index
    %c0_10 = arith.constant 0 : index
    %15 = vector.load %arg5[%c0_9, %c0_10] : memref<1x128xf32, #tpu.memory_space<vmem>>, vector<1x128xf32>
    %16 = vector.broadcast %15 : vector<1x128xf32> to vector<8x128xf32>
    %17 = arith.addf %14, %16 : vector<8x128xf32>
    %c0_11 = arith.constant 0 : index
    %c0_12 = arith.constant 0 : index
    %18 = vector.load %arg6[%c0_11, %c0_12] : memref<8x128xf32, #tpu.memory_space<vmem>>, vector<8x128xf32>
    tpu.vector_store %arg6[%c0_11, %c0_12], %17 {strides = array<i32>} : memref<8x128xf32, #tpu.memory_space<vmem>>, vector<8x128xf32>,
    return
  }
  func.func @transform_0(%arg0: i32) -> (i32, i32) {
    %c0_i32 = arith.constant 0 : i32
    %c0_i32_0 = arith.constant 0 : i32
    return %arg0, %c0_i32 : i32, i32
  }
  func.func @transform_1(%arg0: i32) -> (i32, i32) {
    %c0_i32 = arith.constant 0 : i32
    %c0_i32_0 = arith.constant 0 : i32
    %c0_i32_1 = arith.constant 0 : i32
    return %c0_i32, %c0_i32_0 : i32, i32
  }
  func.func @transform_2(%arg0: i32) -> (i32, i32) {
    %c0_i32 = arith.constant 0 : i32
    %c0_i32_0 = arith.constant 0 : i32
    %c0_i32_1 = arith.constant 0 : i32
    return %c0_i32, %c0_i32_0 : i32, i32
  }
  func.func @transform_3(%arg0: i32) -> (i32, i32) {
    %c0_i32 = arith.constant 0 : i32
    %c0_i32_0 = arith.constant 0 : i32
    %c0_i32_1 = arith.constant 0 : i32
    return %c0_i32, %c0_i32_0 : i32, i32
  }
  func.func @transform_4(%arg0: i32) -> (i32, i32) {
    %c0_i32 = arith.constant 0 : i32
    %c0_i32_0 = arith.constant 0 : i32
    %c0_i32_1 = arith.constant 0 : i32
    return %c0_i32, %c0_i32_0 : i32, i32
  }
  func.func @transform_5(%arg0: i32) -> (i32, i32) {
    %c0_i32 = arith.constant 0 : i32
    %c0_i32_0 = arith.constant 0 : i32
    return %arg0, %c0_i32 : i32, i32
  }
}

</mosaic_0001>

<bundles_post_ra>
// kernel: tpu_custom_call.1
= control target key start
LH: loop header
LB: loop body
LE: loop exit
PB: predicated region body
PF: predicated region fallthrough
CT: control target
= control target key end

     0   :  { %10 = vsyncpa [#allocation3], 0  ;;  %s1449_s0 = inlined_call_operand.hbm [shape: f32[25,256], index: 0, kind: input, shape index: {}]   ;;  %s1450_s1 = inlined_call_operand.hbm [shape: bf16[256,256], index: 1, kind: input, shape index: {}]   ;;  %s1451_s2 = inlined_call_operand.vmem [shape: bf16[1,256], index: 2, kind: input, shape index: {}]   ;;  %s1452_s3 = inlined_call_operand.hbm [shape: bf16[256,128], index: 3, kind: input, shape index: {}]   ;;  %s1453_s4 = inlined_call_operand.vmem [shape: f32[1,128], index: 4, kind: input, shape index: {}]   ;;  %s1454_s5 = inlined_call_operand.hbm [shape: f32[25,128], index: 5, kind: output, shape index: {}]  }
   0x1   :  { %12 = vsyncpa [#allocation3 + $0x1], 0 }
   0x2   :  { %13 = vsyncpa [#allocation6], 0 }
   0x3   :  { %14 = vsyncpa [#allocation4], 0 }
   0x4   :  { %16 = vsyncpa [#allocation4 + $0x1], 0  ;;  %s1269_s18 = smov 0   ;;  %s1271_s19 = smov 0  }
   0x5   :  { %s1273_s20 = smov 0   ;;  %s1275_s21 = smov 0  }
   0x6 LB: > { %s1290_s22 = sadd.s32 4294967295, %s1228_s21   ;;  %s844_s23 = sadd.s32 4294967294, %s1228_s21   ;;  %s1228_s21 = sphi %s1275_s21, %s1475_s21   ;;  %s1224_s20 = sphi %s1273_s20, %s1474_s20   ;;  %s1220_s19 = sphi %s1271_s19, %s1473_s19   ;;  %s1216_s18 = sphi %s1269_s18, %s1472_s18  }
   0x7   : > { %p42_p0 = scmp.ne.s32.totalorder %s1220_s19, %s1216_s18  ;;  %p1455_p1 = scmp.eq.s32.totalorder %s1290_s22, 0 }
   0x8   : > { %p156_p3 = scmp.eq.s32.totalorder %s844_s23, 3  ;;  %p845_p5 = scmp.ge.s32.totalorder %s1228_s21, 1 }
   0x9   : > { %p1299_p4 = por %p1455_p1, %p42_p0  ;;  %p163_p7 = scmp.lt.s32.totalorder %s1228_s21, 5 }
   0xa   : > { %p1304_p6 = por %p156_p3, %p42_p0  ;;  %s1230_s27 = smov [#allocation5]  }
   0xb   : > { %s1459_s24 = scalar_select %p1299_p4, 1, 0 }
   0xc   : > { %s1460_s25 = scalar_select %p1304_p6, 1, 0 }
   0xd   : > { %p1309_p8 = pnand %p845_p5, %p163_p7  ;;  %s175_s28 = sshll.u32 %s1230_s27, 4  ;;  %s176_s28 = int_to_ptr.vmem [resolvable:$true] %s175_s28 }
   0xe   : > { %s1231_s30 = smov [#allocation7]   ;;  %s1091_s7 = scalar_lea.vmem %s176_s28, 4096 }
   0xf   : > { %s1461_s26 = scalar_select %p1309_p8, 1, 0 }
  0x10   : > { %p948_p9 = pneg %p1309_p8  ;;  %s191_s6 = sshll.u32 %s1231_s30, 4  ;;  %s192_s6 = int_to_ptr.vmem [resolvable:$true] %s191_s6 }
  0x11   : > { %p1092_p12 = scmp.ne.s32.totalorder %s176_s28, %s1091_s7  ;;  %p1099_p3 = scmp.lt.s32.totalorder %s176_s28, %s176_s28 }
  0x12   : > { %p1317_p10 = pnand %p948_p9, %p1455_p1  ;;  %p1100_p5 = scmp.lt.s32.totalorder %s1091_s7, %s1091_s7 }
  0x14   : > { %p1082_p11 = pneg %p1317_p10  ;;  %p1101_p7 = por %p1100_p5, %p1099_p3 }
  0x16   : > { %p1094_p13 = pnand %p1092_p12, %p1082_p11 }
  0x18   : > { %p1095_p0 = pneg %p1094_p13 }
  0x1a   : > { %p1102_p9 = pnand %p1101_p7, %p1095_p0 }
  0x1c   : > { %1105 = shalt.err (!%p1102_p9)
}
  0x1d   : > { %s1232_s8 = smov 128   ;;  %s1233_s9 = smov 8  }
  0x1e   : > { %951 = dma.hbm_to_vmem [thread:$0]  (!%p1317_p10), %s1450_s1, 4096, %s176_s28, [#allocation6], %s1232_s8, %s1232_s8, %s1233_s9  }
  0x1f   : > { %s1117_s12 = scalar_lea.vmem %s192_s6, 2048  ;;  %p1125_p2 = scmp.lt.s32.totalorder %s192_s6, %s192_s6 }
  0x20   : > { %p1118_p1 = scmp.ne.s32.totalorder %s192_s6, %s1117_s12  ;;  %p1126_p6 = scmp.lt.s32.totalorder %s1117_s12, %s1117_s12 }
  0x22   : > { %p1120_p12 = pnand %p1118_p1, %p1082_p11  ;;  %p1127_p3 = por %p1126_p6, %p1125_p2 }
  0x24   : > { %p1121_p13 = pneg %p1120_p12 }
  0x26   : > { %p1128_p0 = pnand %p1127_p3, %p1121_p13 }
  0x28   : > { %1131 = shalt.err (!%p1128_p0)
}
  0x29   : > { %s1234_s13 = smov 64   ;;  %s1235_s14 = smov 4  }
  0x2a   : > { %954 = dma.hbm_to_vmem [thread:$0]  (!%p1317_p10), %s1452_s3, 2048, %s192_s6, [#allocation6], %s1234_s13, %s1234_s13, %s1235_s14  }
  0x2b   : > { %s1340_s17 = sadd.s32 1, %s1228_s21   ;;  %s29_s27 = sadd.s32 1, %s1224_s20 }
  0x2c   : > { %s26_s23 = ssub.s32 %s1228_s21, %s1340_s17  ;;  %p36_p2 = scmp.ne.s32.totalorder %s1224_s20, %s1220_s19 }
  0x2d   : > { %p27_p1 = scmp.eq.s32.totalorder %s26_s23, 0  ;;  %p37_p6 = scmp.eq.s32.totalorder %s1228_s21, 0 }
  0x2e   : > { %p1463_p5 = scmp.eq.s32.totalorder %s1290_s22, 3  ;;  %p965_p9 = scmp.lt.s32.totalorder %s1228_s21, 4 }
  0x2f   : > { %s1349_s28 = scalar_select %p27_p1, %s1224_s20, %s29_s27  }
  0x30   : > { %p38_p11 = por %p37_p6, %p36_p2  ;;  %p1353_p7 = por %p1463_p5, %p36_p2 }
  0x31   : > { %s208_s29 = sand.u32 1, %s1224_s20   ;;  %s913_s6 = sshll.u32 %s1228_s21, 8 }
  0x32   : > { %s1464_s30 = scalar_select %p1353_p7, 1, 0 }
  0x33   : > { %s849_s7 = sshll.u32 %s208_s29, 4  ;;  %s1363_s10 = scalar_lea.hbm %s1449_s0, %s913_s6 }
  0x34   : > { %s212_s11 = scalar_lea.vmem [#allocation2], %s849_s7  ;;  %p1365_p10 = pnand %p965_p9, %p38_p11 }
  0x35   : > { %s220_s12 = sshll.u32 %s212_s11, 4  ;;  %s209_s14 = scalar_lea.sflag [#allocation3], %s208_s29  ;;  %s221_s12 = int_to_ptr.vmem [resolvable:$true] %s220_s12 }
  0x36   : > { %s1132_s15 = scalar_lea.hbm %s1363_s10, 256  ;;  %p1134_p13 = pneg %p1365_p10 }
  0x37   : > { %p1133_p12 = scmp.ne.s32.totalorder %s1363_s10, %s1132_s15  ;;  %s1137_s27 = scalar_lea.hbm %s1449_s0, 1024 }
  0x38   : > { %p1138_p1 = scmp.lt.s32.totalorder %s1363_s10, %s1449_s0  ;;  %p1139_p2 = scmp.lt.s32.totalorder %s1137_s27, %s1132_s15 }
  0x39   : > { %p1135_p3 = pnand %p1134_p13, %p1133_p12 }
  0x3a   : > { %p1140_p6 = por %p1139_p2, %p1138_p1 }
  0x3b   : > { %p1136_p0 = pneg %p1135_p3 }
  0x3d   : > { %p1141_p11 = pnand %p1140_p6, %p1136_p0 }
  0x3f   : > { %1144 = shalt.err (!%p1141_p11)
}
  0x40   : > { %s1145_s8 = scalar_lea.vmem %s221_s12, 256  ;;  %s1236_s29 = smov [#allocation2]  }
  0x41   : > { %p1146_p5 = scmp.ne.s32.totalorder %s221_s12, %s1145_s8  ;;  %s1150_s9 = sshll.u32 %s1236_s29, 4  ;;  %s1151_s9 = int_to_ptr.vmem [resolvable:$false] %s1150_s9 }
  0x42   : > { %s1152_s11 = scalar_lea.vmem %s1151_s9, 512  ;;  %p1153_p12 = scmp.lt.s32.totalorder %s221_s12, %s1151_s9 }
  0x43   : > { %p1148_p9 = pnand %p1146_p5, %p1134_p13  ;;  %p1154_p3 = scmp.lt.s32.totalorder %s1152_s11, %s1145_s8 }
  0x45   : > { %p1149_p7 = pneg %p1148_p9  ;;  %p1155_p4 = por %p1154_p3, %p1153_p12 }
  0x47   : > { %p1156_p8 = pnand %p1155_p4, %p1149_p7 }
  0x49   : > { %1159 = shalt.err (!%p1156_p8)
}
  0x4a   : > { %958 = dma.hbm_to_vmem [thread:$0]  (!%p1365_p10), %s1363_s10, 256, %s221_s12, %s209_s14  }
  0x4b   : > { %p1466_p0 = scmp.ne.s32.totalorder %s1461_s26, 0 }
  0x4c   : > { %s1386_s15 = sand.u32 (!%p1466_p0), 1, %s1220_s19   ;;  %p1467_p13 = scmp.ne.s32.totalorder (!%p1466_p0), %s1459_s24, 0 }
  0x4d   : > { %229 = sbr.rel (%p1466_p0) target bundleno = 599 (0x257), region = 40  ;;  %s853_s16 = sshll.u32 (!%p1466_p0), %s1386_s15, 4 }
  0x4e   : > { %s232_s23 = scalar_lea.sflag (!%p1466_p0), [#allocation3], %s1386_s15  ;;  %s1390_s27 = scalar_lea.vmem (!%p1466_p0), [#allocation2], %s853_s16 }
  0x52   : > { %1203 = dma.done.wait (%p1467_p13), %s232_s23, 256  }
  0x53   : > { %1205 = vsyncadd (%p1467_p13), %s232_s23, 4294967040  ;;  %p1468_p4 = scmp.eq.s32.totalorder %s1290_s22, 0 }
  0x55   : > { %1207 = dma.done.wait (%p1468_p4), [#allocation6], 6144   ;;  %p1469_p8 = pmov %p1468_p4 }
  0x56   : > { %v1008_v0 = vld [vmem:[#allocation5 + $0x74] ss:$8 sps:$4 sm:$0xff]   ;;  %v1010_v1 = vld [vmem:[#allocation5 + $0x70] ss:$8 sps:$4 sm:$0xff]   ;;  %v1011_v2 = vld [vmem:[#allocation5 + $0x64] ss:$8 sps:$4 sm:$0xff]   ;;  %v524_v54 = vlaneseq }
  0x57   : > { %1209 = vsyncadd (%p1469_p8), [#allocation6], 4294961152  ;;  %468 = vmatprep.subr.bf16.mxu0 %v1008_v0  ;;  %v1013_v3 = vld [vmem:[#allocation5 + $0x60] ss:$8 sps:$4 sm:$0xff]   ;;  %v1014_v4 = vld [vmem:[#allocation5 + $0x54] ss:$8 sps:$4 sm:$0xff]  }
  0x58   : > { %469 = vmatpush1.bf16.msra.mxu0 %v1010_v1  ;;  %v1016_v5 = vld [vmem:[#allocation5 + $0x50] ss:$8 sps:$4 sm:$0xff]   ;;  %v1017_v6 = vld [vmem:[#allocation5 + $0x44] ss:$8 sps:$4 sm:$0xff]   ;;  %v1019_v7 = vld [vmem:[#allocation5 + $0x40] ss:$8 sps:$4 sm:$0xff]  }
  0x59   : > { %470 = vmatprep.subr.bf16.mxu0 %v1011_v2  ;;  %v1020_v8 = vld [vmem:[#allocation5 + $0x34] ss:$8 sps:$4 sm:$0xff]   ;;  %v1022_v9 = vld [vmem:[#allocation5 + $0x30] ss:$8 sps:$4 sm:$0xff]   ;;  %v1023_v10 = vld [vmem:[#allocation5 + $0x24] ss:$8 sps:$4 sm:$0xff]  }
  0x5a   : > { %v1025_v11 = vld [vmem:[#allocation5 + $0x20] ss:$8 sps:$4 sm:$0xff]   ;;  %v1026_v12 = vld [vmem:[#allocation5 + $0x14] ss:$8 sps:$4 sm:$0xff]   ;;  %v1028_v13 = vld [vmem:[#allocation5 + $0x10] ss:$8 sps:$4 sm:$0xff]  }
  0x5b   : > { %v273_v14 = vld [vmem:[%s1390_s27 + $0x8] sm:$0xff]  ;;  %v272_v34 = vld [vmem:[%s1390_s27] sm:$0xff]  ;;  %v1237_v52 = vmov 1966171168   ;;  %v525_v56 = vshrl.u32 %v524_v54, 7  ;;  %s856_s10 = sshll.u32 %s1386_s15, 3 }
  0x5c   : > { %471 = vmatpush1.bf16.msra.mxu0 %v1013_v3  ;;  %v1029_v15 = vld [vmem:[#allocation5 + $0x4] ss:$8 sps:$4 sm:$0xff]   ;;  %v275_v16 = vpack.c.bf16 %v273_v14, %v273_v14  ;;  %v1031_v17 = vld [vmem:[#allocation5] ss:$8 sps:$4 sm:$0xff]   ;;  %v1032_v18 = vld [vmem:[#allocation5 + $0xf4] ss:$8 sps:$4 sm:$0xff]   ;;  %v274_v35 = vpack.c.bf16 %v272_v34, %v272_v34  ;;  %v522_v53 = vunpack.c.l.s4 %v1237_v52 }
  0x5d   : > { %472 = vmatprep.subr.bf16.mxu0 %v1014_v4  ;;  %v1034_v19 = vld [vmem:[#allocation5 + $0xf0] ss:$8 sps:$4 sm:$0xff]   ;;  %v1035_v20 = vld [vmem:[#allocation5 + $0xe4] ss:$8 sps:$4 sm:$0xff]   ;;  %v1037_v21 = vld [vmem:[#allocation5 + $0xe0] ss:$8 sps:$4 sm:$0xff]  }
  0x5e   : > { %500 = vmatprep.mubr.bf16.mxu0 %v275_v16  ;;  %v1038_v22 = vld [vmem:[#allocation5 + $0xd4] ss:$8 sps:$4 sm:$0xff]   ;;  %v1040_v23 = vld [vmem:[#allocation5 + $0xd0] ss:$8 sps:$4 sm:$0xff]   ;;  %v1041_v24 = vld [vmem:[#allocation5 + $0xc4] ss:$8 sps:$4 sm:$0xff]   ;;  %v523_v55 = vunpack.c.0.s8 %v522_v53 }
  0x5f   : > { %v1043_v25 = vld [vmem:[#allocation5 + $0xc0] ss:$8 sps:$4 sm:$0xff]   ;;  %v1044_v26 = vld [vmem:[#allocation5 + $0xb4] ss:$8 sps:$4 sm:$0xff]   ;;  %v1046_v27 = vld [vmem:[#allocation5 + $0xb0] ss:$8 sps:$4 sm:$0xff]  }
  0x60   : > { %473 = vmatpush1.bf16.msra.mxu0 %v1016_v5  ;;  %v1047_v28 = vld [vmem:[#allocation5 + $0xa4] ss:$8 sps:$4 sm:$0xff]   ;;  %v1049_v29 = vld [vmem:[#allocation5 + $0xa0] ss:$8 sps:$4 sm:$0xff]   ;;  %v1050_v30 = vld [vmem:[#allocation5 + $0x94] ss:$8 sps:$4 sm:$0xff]   ;;  %v526_v58 = vsub.s32 %v523_v55, %v525_v56 }
  0x61   : > { %474 = vmatprep.subr.bf16.mxu0 %v1017_v6  ;;  %v1052_v31 = vld [vmem:[#allocation5 + $0x90] ss:$8 sps:$4 sm:$0xff]   ;;  %v1053_v32 = vld [vmem:[#allocation5 + $0x84] ss:$8 sps:$4 sm:$0xff]   ;;  %v1055_v33 = vld [vmem:[#allocation5 + $0x80] ss:$8 sps:$4 sm:$0xff]  }
  0x62   : > { %v1056_v36 = vld [vmem:[#allocation7 + $0x78] sm:$0xff]   ;;  %v1058_v38 = vld [vmem:[#allocation7 + $0x70] sm:$0xff]   ;;  %v1060_v40 = vld [vmem:[#allocation7 + $0x68] sm:$0xff]   ;;  %v540_v63 = vsub.s32 0, %v525_v56  ;;  %s910_s14 = sshll.u32 %s1290_s22, 7  ;;  %s269_s6 = scalar_lea.vmem [#allocation8], %s856_s10 }
  0x63   : > { %v1057_v37 = vld [vmem:[#allocation7 + $0x38] sm:$0xff]   ;;  %914 = vmatprep.subr.bf16.mxu1 %v1056_v36  ;;  %v1059_v39 = vld [vmem:[#allocation7 + $0x30] sm:$0xff]   ;;  %v1061_v41 = vld [vmem:[#allocation7 + $0x28] sm:$0xff]   ;;  %s755_s7 = sshll.u32 %s269_s6, 4  ;;  %s1413_s9 = scalar_lea.hbm %s1454_s5, %s910_s14  ;;  %s756_s7 = int_to_ptr.vmem [resolvable:$true] %s755_s7 }
  0x64   : > { %475 = vmatpush1.bf16.msra.mxu0 %v1019_v7  ;;  %915 = vmatpush3.bf16.msra.mxu1 %v1057_v37  ;;  %v1062_v42 = vld [vmem:[#allocation7 + $0x60] sm:$0xff]   ;;  %v1064_v44 = vld [vmem:[#allocation7 + $0x58] sm:$0xff]   ;;  %v1066_v46 = vld [vmem:[#allocation7 + $0x50] sm:$0xff]   ;;  %s742_s11 = scalar_lea.sflag [#allocation4], %s1386_s15  ;;  %s1160_s16 = scalar_lea.vmem %s756_s7, 128 }
  0x65   : > { %476 = vmatprep.subr.bf16.mxu0 %v1020_v8  ;;  %916 = vmatprep.subr.bf16.mxu1 %v1058_v38  ;;  %v1063_v43 = vld [vmem:[#allocation7 + $0x20] sm:$0xff]   ;;  %v1065_v45 = vld [vmem:[#allocation7 + $0x18] sm:$0xff]   ;;  %v1067_v47 = vld [vmem:[#allocation7 + $0x10] sm:$0xff]   ;;  %p1161_p7 = scmp.ne.s32.totalorder %s756_s7, %s1160_s16  ;;  %p1470_p10 = scmp.ne.s32.totalorder %s1464_s30, 0 }
  0x66   : > { %v1068_v48 = vld [vmem:[#allocation7 + $0x48] sm:$0xff]   ;;  %v1070_v50 = vld [vmem:[#allocation7 + $0x40] sm:$0xff]   ;;  %s1238_s22 = smov [#allocation8]  }
  0x67   : > { %v1069_v49 = vld [vmem:[#allocation7 + $0x8] sm:$0xff]   ;;  %v1071_v51 = vld [vmem:[#allocation7] sm:$0xff]   ;;  %p1162_p1 = pnand %p1161_p7, %p1470_p10  ;;  %s1164_s23 = sshll.u32 %s1238_s22, 4  ;;  %s1165_s23 = int_to_ptr.vmem [resolvable:$false] %s1164_s23 }
  0x68   : > { %477 = vmatpush1.bf16.msra.mxu0 %v1022_v9  ;;  %917 = vmatpush3.bf16.msra.mxu1 %v1059_v39  ;;  %v889_v57 = vld.sshfl [vmem:[%s1451_s2] sm:$0x11 pattern:$0x75316420]  ;;  %s1166_s27 = scalar_lea.vmem %s1165_s23, 256  ;;  %p1167_p6 = scmp.lt.s32.totalorder %s756_s7, %s1165_s23 }
  0x69   : > { %478 = vmatprep.subr.bf16.mxu0 %v1023_v10  ;;  %918 = vmatprep.subr.bf16.mxu1 %v1060_v40  ;;  %v520_v59 = vcombine.high %v889_v57, %v889_v57  ;;  %v527_v60 = vrot.slane %v889_v57, %v526_v58  ;;  %p1163_p2 = pneg %p1162_p1  ;;  %p1168_p11 = scmp.lt.s32.totalorder %s1166_s27, %s1160_s16 }
  0x6b   : > { %v534_v61 = vrot.slane %v520_v59, %v526_v58  ;;  %v536_v62 = vpack.i.b16 %v527_v60, %v527_v60  ;;  %p1169_p5 = por %p1168_p11, %p1167_p6 }
  0x6c   : > { %479 = vmatpush1.bf16.msra.mxu0 %v1025_v11  ;;  %919 = vmatpush3.bf16.msra.mxu1 %v1061_v41 }
  0x6d   : > { %480 = vmatprep.subr.bf16.mxu0 %v1026_v12  ;;  %920 = vmatprep.subr.bf16.mxu1 %v1062_v42  ;;  %v543_v0 = vpack.i.b16 %v534_v61, %v534_v61  ;;  %v541_v1 = vrot.slane %v536_v62, %v540_v63  ;;  %p1170_p9 = pnand %p1169_p5, %p1163_p2 }
  0x6f   : > { %v548_v4 = vrot.slane %v543_v0, %v540_v63 }
  0x70   : > { %481 = vmatpush1.bf16.msra.mxu0 %v1028_v13  ;;  %921 = vmatpush3.bf16.msra.mxu1 %v1063_v43 }
  0x71   : > { %482 = vmatprep.subr.bf16.mxu0 %v1029_v15  ;;  %922 = vmatprep.subr.bf16.mxu1 %v1064_v44 }
  0x74   : > { %483 = vmatpush1.bf16.msra.mxu0 %v1031_v17  ;;  %923 = vmatpush3.bf16.msra.mxu1 %v1065_v45 }
  0x75   : > { %484 = vmatprep.subr.bf16.mxu0 %v1032_v18  ;;  %924 = vmatprep.subr.bf16.mxu1 %v1066_v46 }
  0x78   : > { %485 = vmatpush2.bf16.msra.mxu0 %v1034_v19  ;;  %925 = vmatpush3.bf16.msra.mxu1 %v1067_v47 }
  0x79   : > { %486 = vmatprep.subr.bf16.mxu0 %v1035_v20  ;;  %926 = vmatprep.subr.bf16.mxu1 %v1068_v48 }
  0x7c   : > { %487 = vmatpush2.bf16.msra.mxu0 %v1037_v21  ;;  %927 = vmatpush3.bf16.msra.mxu1 %v1069_v49 }
  0x7d   : > { %488 = vmatprep.subr.bf16.mxu0 %v1038_v22  ;;  %928 = vmatprep.subr.bf16.mxu1 %v1070_v50  ;;  %v892_v22 = vld [vmem:[%s1453_s4] ss:$0 sm:$0xff] }
  0x80   : > { %489 = vmatpush2.bf16.msra.mxu0 %v1040_v23  ;;  %929 = vmatpush3.bf16.msra.mxu1 %v1071_v51 }
  0x81   : > { %490 = vmatprep.subr.bf16.mxu0 %v1041_v24 }
  0x84   : > { %491 = vmatpush2.bf16.msra.mxu0 %v1043_v25 }
  0x85   : > { %492 = vmatprep.subr.bf16.mxu0 %v1044_v26 }
  0x88   : > { %493 = vmatpush2.bf16.msra.mxu0 %v1046_v27 }
  0x89   : > { %494 = vmatprep.subr.bf16.mxu0 %v1047_v28 }
  0x8c   : > { %495 = vmatpush2.bf16.msra.mxu0 %v1049_v29 }
  0x8d   : > { %496 = vmatprep.subr.bf16.mxu0 %v1050_v30 }
  0x90   : > { %497 = vmatpush2.bf16.msra.mxu0 %v1052_v31 }
  0x91   : > { %498 = vmatprep.subr.bf16.mxu0 %v1053_v32 }
  0x94   : > { %499 = vmatpush2.bf16.msra.mxu0 %v1055_v33 }
  0x97   : > { %501 = vmatmul.mubr.bf16.vlgmr.msra.gmra.mxu0 %v274_v35 }
 0x157   : > { %v502_v2 = vpop.f32.mrf.mxu0 }
 0x158   : > { %v509_v3 = vpack.c.bf16 %v502_v2, %v502_v2 }
 0x159   : > { %v504_v5 = vpop.f32.mrf.mxu0 }
 0x15a   : > { %v549_v6 = vadd.bf16 %v541_v1, %v509_v3  ;;  %v510_v7 = vpack.c.bf16 %v504_v5, %v504_v5 }
 0x15b   : > { %v506_v8 = vpop.f32.mrf.mxu0 }
 0x15c   : > { %v890_v9 = vmul.bf16 3216621497, %v549_v6  ;;  %v550_v10 = vadd.bf16 %v548_v4, %v510_v7 }
 0x15d   : > { %v507_v11 = vpop.f32.mrf.mxu0 }
 0x15e   : > { %1072 = vpow.bf16 %v890_v9  ;;  %v891_v12 = vmul.bf16 3216621497, %v550_v10 }
 0x160   : > { %1074 = vpow.bf16 %v891_v12 }
 0x16c   : > { %v1073_v13 = vpop.eup %1072 }
 0x16d   : > { %v559_v14 = vadd.bf16 1065369472, %v1073_v13 }
 0x16e   : > { %v1075_v15 = vpop.eup %1074 }
 0x16f   : > { %v560_v16 = vadd.bf16 1065369472, %v1075_v15  ;;  %1076 = vrcp.bf16 %v559_v14 }
 0x171   : > { %1078 = vrcp.bf16 %v560_v16 }
 0x17d   : > { %v1077_v17 = vpop.eup %1076 }
 0x17e   : > { %v562_v20 = vmul.bf16 1065369472, %v1077_v17 }
 0x17f   : > { %v1079_v18 = vpop.eup %1078 }
 0x180   : > { %v564_v19 = vmul.bf16 1065369472, %v1079_v18 }
 0x182   : > { %732 = vmatprep.mubr.bf16.mxu1 %v564_v19 }
 0x183   : > { %733 = vmatmul.mubr.bf16.vlgmr.msra.gmra.mxu1 %v562_v20 }
 0x243   : > { %v930_v21 = vpop.f32.mrf.mxu1 }
 0x245   : > { %v931_v23 = vpop.f32.mrf.mxu1 }
 0x246   : > { %v932_v24 = vadd.f32 %v931_v23, %v930_v21 }
 0x247   : > { %v933_v25 = vpop.f32.mrf.mxu1 }
 0x248   : > { %v735_v26 = vadd.f32 %v932_v24, %v892_v22 }
 0x249   : > { %v934_v27 = vpop.f32.mrf.mxu1 }
 0x24a   : > { %740 = vst [vmem:[%s269_s6] sm:$0xff] %v735_v26 }
 0x24b   : > { %1173 = shalt.err (!%p1170_p9)
}
 0x24c   : > { %s1174_s24 = scalar_lea.hbm %s1413_s9, 128  ;;  %s1178_s10 = scalar_lea.hbm %s1454_s5, 512 }
 0x24d   : > { %p1175_p12 = scmp.ne.s32.totalorder %s1413_s9, %s1174_s24  ;;  %p1179_p13 = scmp.lt.s32.totalorder %s1413_s9, %s1454_s5 }
 0x24e   : > { %p1180_p4 = scmp.lt.s32.totalorder %s1178_s10, %s1174_s24 }
 0x24f   : > { %p1176_p3 = pnand %p1175_p12, %p1470_p10 }
 0x250   : > { %p1181_p8 = por %p1180_p4, %p1179_p13 }
 0x251   : > { %p1177_p0 = pneg %p1176_p3 }
 0x253   : > { %p1182_p7 = pnand %p1181_p8, %p1177_p0 }
 0x255   : > { %1185 = shalt.err (!%p1182_p7)
}
 0x256   : > { %946 = dma.vmem_to_hbm [thread:$0]  (%p1470_p10), %s756_s7, 128, %s1413_s9, %s742_s11  }
 0x257 PF: > { %p968_p1 = scmp.ge.s32.totalorder %s1228_s21, 2  ;;  %s767_s14 = sand.u32 1, %s1216_s18  }
 0x258   : > { %p1471_p2 = scmp.ne.s32.totalorder %s1460_s25, 0  ;;  %s768_s6 = scalar_lea.sflag [#allocation4], %s767_s14 }
 0x25a   : > { %p960_p6 = pnand %p968_p1, %p1471_p2 }
 0x25c   : > { %p961_p11 = pneg %p960_p6 }
 0x25e   : > { %1211 = dma.done.wait (%p961_p11), %s768_s6, 128  }
 0x25f   : > { %1213 = vsyncadd (%p961_p11), %s768_s6, 4294967168  ;;  %p19_p5 = scmp.ge.s32.totalorder %s1340_s17, 6   ;;  %s1472_s18 = smov %s1220_s19 }
 0x260   : > { %s1473_s19 = smov %s1224_s20  ;;  %s1474_s20 = smov %s1349_s28 }
 0x261   : > { %s1475_s21 = smov %s1340_s17  ;;  %21 = sbr.rel (!%p19_p5) target bundleno = 6 (0x6), region = 93 }
 0x266   :  { %773 = vsyncpa [#allocation3], 1 }
 0x267   :  { %775 = vsyncpa [#allocation3 + $0x1], 1 }
 0x268   :  { %776 = vsyncpa [#allocation6], 1 }
 0x269   :  { %777 = vsyncpa [#allocation4], 1 }
 0x26a   :  { %779 = vsyncpa [#allocation4 + $0x1], 1 }

</bundles_post_ra>
